<compile_context>
chip_gen: v5e
topology: v5e:2x2
jax: 0.10.0
libtpu: 0.0.40
codegen_flags: <defaults>
</compile_context>

<pallas_src>
import functools
import math

import jax
import jax.numpy as jnp
from jax import lax
from jax.experimental import pallas as pl
from jax.experimental.pallas import tpu as pltpu

_INV_SQRT2 = 1.0 / math.sqrt(2.0)


def _round_up(a, b):
    return (a + b - 1) // b * b


def _pick_tile(dim, cap):
    """Largest multiple of 128 that divides `dim` (itself a multiple of 128), <= cap."""
    t = max(128, (min(cap, dim) // 128) * 128)
    while t > 128 and dim % t != 0:
        t -= 128
    return t


def _vmem_capacity_bytes():
    try:
        return int(pltpu.get_tpu_info().vmem_capacity_bytes)
    except Exception:
        # Unknown: assume the smallest per-TensorCore VMEM (v7x, 64 MiB).
        return 64 * 2**20


def _gelu_exact(y):
    # nn.GELU() default (approximate='none'); erf runs on the EUP slot.
    return 0.5 * y * (1.0 + lax.erf(y * _INV_SQRT2))


# ---------------------------------------------------------------------------- kernels
def _mlp_kernel_resident(x_ref, w_ref, b_ref, o_ref):
    """Full-K contraction in one step: no accumulator, output written once."""
    y = jnp.dot(x_ref[...], w_ref[...], preferred_element_type=jnp.float32)
    y = y + b_ref[...]
    o_ref[...] = _gelu_exact(y).astype(o_ref.dtype)


def _mlp_kernel_streamed(x_ref, w_ref, b_ref, o_ref, acc_ref):
    """K is the innermost (reduction) grid axis; f32 accumulator in VMEM scratch."""
    k = pl.program_id(2)

    @pl.when(k == 0)
    def _init():
        # Bias folded into the accumulator init (replaces zeros-store + finalize add).
        acc_ref[...] = jnp.broadcast_to(b_ref[...], acc_ref.shape)

    acc_ref[...] += jnp.dot(x_ref[...], w_ref[...], preferred_element_type=jnp.float32)

    @pl.when(k == pl.num_programs(2) - 1)
    def _finalize():
        o_ref[...] = _gelu_exact(acc_ref[...]).astype(o_ref.dtype)


# --------------------------------------------------------------------------- wrappers
def prepare_params(weight, bias):
    """One-time init: nn.Linear weight (N, K) -> (Kp, Np) bf16 (transposed, padded),
    bias (N,) -> (1, Np) f32.  Keeps all static-param work out of the hot path."""
    N, K = weight.shape
    assert bias.shape == (N,)
    Kp, Np = _round_up(K, 128), _round_up(N, 128)
    w_t = jnp.zeros((Kp, Np), jnp.bfloat16).at[:K, :N].set(weight.T.astype(jnp.bfloat16))
    b2 = jnp.zeros((1, Np), jnp.float32).at[:, :N].set(bias.astype(jnp.float32))
    return w_t, b2, int(N)


def mlp_layer(x, w_t, bias2d, n_out, *, path=None):
    """Linear(+bias) + exact GELU.

    x:      (..., K) activations (any float dtype; streamed to the MXU as bf16).
    w_t:    (Kp, Np) bf16 pre-transposed / padded weight from prepare_params.
    bias2d: (1, Np)  f32 bias from prepare_params.
    n_out:  true output feature count (<= Np).
    path:   None (auto) | "resident" | "streamed"  (mostly for testing).
    """
    out_dtype = x.dtype
    lead = x.shape[:-1]
    K = x.shape[-1]
    Kp, Np = w_t.shape
    assert bias2d.shape == (1, Np)
    assert K <= Kp

    # Stream activations as bf16; only x is padded per call (weight is pre-padded).
    x2 = x.reshape(-1, K).astype(jnp.bfloat16)
    if K != Kp:
        x2 = jnp.pad(x2, ((0, 0), (0, Kp - K)))
    M = x2.shape[0]

    ob = jnp.dtype(out_dtype).itemsize
    vmem_cap = _vmem_capacity_bytes()
    tile_budget = int(0.55 * vmem_cap)        # headroom for Mosaic internal scratch

    # tm: 512 cap everywhere, 1024 on 128-MiB-VMEM chips (v5e/v6e) with large M.
    tm_cap = 1024 if (M >= 1024 and vmem_cap >= 96 * 2**20) else 512
    tm = min(tm_cap, _round_up(M, 8))
    mb = pl.cdiv(M, tm)

    # ---- weight-resident plan (full-K slab, no accumulator) --------------------
    resident = None
    cands = [t for t in (2048, 1024, 512, 256, 128) if t <= Np and Np % t == 0]
    if mb == 1 and Np >= 256:
        # Keep >= 2 blocks on a parallel axis so both v7x TensorCores get work.
        cands = [t for t in cands if Np // t >= 2] or cands
    for tn_r in cands:
        est_r = 2 * (tm * Kp * 2 + Kp * tn_r * 2 + tn_r * 4) + 2 * tm * tn_r * ob
        if est_r <= tile_budget:
            resident = (tn_r, est_r)
            break

    # ---- streamed plan (K reduction grid axis, f32 accumulator) ----------------
    tn_s = _pick_tile(Np, 512)
    if mb == 1 and Np // tn_s == 1 and Np >= 256:
        tn_s = _pick_tile(Np, Np // 2)
    tk = _pick_tile(Kp, 2048)

    def _est_s(tk_):
        return (2 * (tm * tk_ * 2 + tk_ * tn_s * 2 + tn_s * 4)
                + 2 * tm * tn_s * ob + tm * tn_s * 4)

    while tk > 128 and _est_s(tk) > tile_budget:
        tk = _pick_tile(Kp, tk - 128)
    est_s = _est_s(tk)

    # ---- choose path by modelled HBM traffic (resident also kills the acc RMW) --
    if path is None:
        if resident is None:
            path = "streamed"
        else:
            nb_r = Np // resident[0]
            traffic_r = Kp * Np * 2 + M * Kp * 2 * nb_r + M * Np * ob
            traffic_s = Kp * Np * 2 * mb + M * Kp * 2 + M * Np * ob
            path = "resident" if traffic_r <= 1.05 * traffic_s else "streamed"
    if path == "resident" and resident is None:
        path = "streamed"

    if path == "resident":
        tn, est = resident
        nb = Np // tn
        grid = (nb, mb)  # weight axis outermost: each (Kp, tn) slab DMA'd exactly once
        cost = pl.CostEstimate(
            flops=2 * M * Kp * Np,
            transcendentals=M * Np,
            bytes_accessed=Kp * Np * 2 + M * Kp * 2 * nb + Np * 4 + M * Np * ob,
        )
        out = pl.pallas_call(
            _mlp_kernel_resident,
            out_shape=jax.ShapeDtypeStruct((M, Np), out_dtype),
            grid=grid,
            in_specs=[
                pl.BlockSpec((tm, Kp), lambda j, i: (i, 0)),   # x slab
                pl.BlockSpec((Kp, tn), lambda j, i: (0, j)),   # weight slab (resident)
                pl.BlockSpec((1, tn), lambda j, i: (0, j)),    # bias
            ],
            out_specs=pl.BlockSpec((tm, tn), lambda j, i: (i, j)),
            compiler_params=pltpu.CompilerParams(
                dimension_semantics=("parallel", "parallel"),
                vmem_limit_bytes=int(min(0.70 * vmem_cap,
                                         max(32 * 2**20, est + 8 * 2**20))),
            ),
            cost_estimate=cost,
        )(x2, w_t, bias2d)
    else:
        tn, est = tn_s, est_s
        grid = (mb, Np // tn, Kp // tk)
        cost = pl.CostEstimate(
            flops=2 * M * Kp * Np,
            transcendentals=M * Np,
            bytes_accessed=M * Kp * 2 + Kp * Np * 2 * mb + Np * 4 + M * Np * ob,
        )
        out = pl.pallas_call(
            _mlp_kernel_streamed,
            out_shape=jax.ShapeDtypeStruct((M, Np), out_dtype),
            grid=grid,
            in_specs=[
                pl.BlockSpec((tm, tk), lambda i, j, k: (i, k)),   # x tile
                # If a profile shows exposed DMA on the weight stream, add
                # pipeline_mode=pl.Buffered(3) here (+tk*tn*2 bytes of VMEM).
                pl.BlockSpec((tk, tn), lambda i, j, k: (k, j)),   # weight tile (streams)
                pl.BlockSpec((1, tn), lambda i, j, k: (0, j)),    # bias tile
            ],
            out_specs=pl.BlockSpec((tm, tn), lambda i, j, k: (i, j)),
            scratch_shapes=[pltpu.VMEM((tm, tn), jnp.float32)],
            compiler_params=pltpu.CompilerParams(
                dimension_semantics=("parallel", "parallel", "arbitrary"),
                vmem_limit_bytes=int(min(0.70 * vmem_cap,
                                         max(32 * 2**20, est + 8 * 2**20))),
            ),
            cost_estimate=cost,
        )(x2, w_t, bias2d)

    out = out[:, :n_out]
    return out.reshape(*lead, n_out)


# ------------------------------------------------------------------------------ demo
if __name__ == "__main__":
    # Small shapes implied by the module: batch=8, input_dim=32, output_dim=64.
    batch, input_dim, output_dim = 8, 32, 64

    key = jax.random.PRNGKey(0)
    kx, kw, kb = jax.random.split(key, 3)

    x = jax.random.normal(kx, (batch, input_dim), dtype=jnp.float32)
    # Deterministic init mirroring nn.Linear's uniform(-1/sqrt(in), 1/sqrt(in)).
    bound = 1.0 / math.sqrt(input_dim)
    weight = jax.random.uniform(kw, (output_dim, input_dim), jnp.float32, -bound, bound)
    bias = jax.random.uniform(kb, (output_dim,), jnp.float32, -bound, bound)

    # One-time init work (transpose / cast / pad of the static params).
    w_t, b2, n_out = prepare_params(weight, bias)

    mlp = jax.jit(mlp_layer, static_argnums=(3,), static_argnames=("path",))

    out = jax.block_until_ready(mlp(x, w_t, b2, n_out))                       # auto
    out_res = jax.block_until_ready(mlp(x, w_t, b2, n_out, path="resident"))  # fast path
    out_str = jax.block_until_ready(mlp(x, w_t, b2, n_out, path="streamed"))  # general
    assert out.shape == (batch, output_dim)
    assert out.dtype == x.dtype

    # Tight check against a reference using the same bf16 MXU operands + f32 math.
    xb16 = x.astype(jnp.bfloat16).astype(jnp.float32)
    wb16 = w_t[:input_dim, :output_dim].astype(jnp.float32)
    y = jnp.dot(xb16, wb16, precision=lax.Precision.HIGHEST) + bias
    ref_bf16 = 0.5 * y * (1.0 + lax.erf(y * _INV_SQRT2))
    for o in (out, out_res, out_str):
        assert jnp.allclose(o, ref_bf16, atol=1e-4, rtol=1e-4), \
            float(jnp.max(jnp.abs(o - ref_bf16)))

    # Loose check against the full-f32 PyTorch-equivalent reference
    # (bf16 MXU operands change numerics at roughly the 1e-3..1e-2 level).
    yf = jnp.dot(x, weight.T, precision=lax.Precision.HIGHEST) + bias
    ref_f32 = 0.5 * yf * (1.0 + lax.erf(yf * _INV_SQRT2))
    assert jnp.allclose(out, ref_f32, atol=5e-2, rtol=5e-2), \
        float(jnp.max(jnp.abs(out - ref_f32)))

    print("KERNEL_OK")
</pallas_src>

<mosaic_0001>
module attributes {stable_mosaic.version = 11 : i64} {
  func.func @_mlp_kernel_resident(%arg0: i32, %arg1: i32, %arg2: memref<8x128xbf16, #tpu.memory_space<vmem>>, %arg3: memref<128x128xbf16, #tpu.memory_space<vmem>>, %arg4: memref<1x128xf32, #tpu.memory_space<vmem>>, %arg5: memref<8x128xf32, #tpu.memory_space<vmem>>) attributes {dimension_semantics = [#tpu.dimension_semantics<parallel>, #tpu.dimension_semantics<parallel>], iteration_bounds = array<i64: 1, 1>, scalar_prefetch = 0 : i64, scratch_operands = 0 : i64, tpu.core_type = #tpu.core_type<tc>, window_params = [{transform_indices = @transform_0, window_bounds = array<i64: 8, 128>}, {transform_indices = @transform_1, window_bounds = array<i64: 128, 128>}, {transform_indices = @transform_2, window_bounds = array<i64: 1, 128>}, {transform_indices = @transform_3, window_bounds = array<i64: 8, 128>}]} {
    %c0 = arith.constant 0 : index
    %c0_0 = arith.constant 0 : index
    %0 = vector.load %arg2[%c0, %c0_0] : memref<8x128xbf16, #tpu.memory_space<vmem>>, vector<8x128xbf16>
    %c0_1 = arith.constant 0 : index
    %c0_2 = arith.constant 0 : index
    %1 = vector.load %arg3[%c0_1, %c0_2] : memref<128x128xbf16, #tpu.memory_space<vmem>>, vector<128x128xbf16>
    %cst = arith.constant dense<0.000000e+00> : vector<8x128xf32>
    %2 = tpu.matmul %0, %1, %cst {dimension_numbers = #tpu.dot_dimension_numbers<[1], [0], [0], [1], [0, 0, 1, 1], [], []>} : vector<8x128xbf16>, vector<128x128xbf16>, vector<8x128xf32> -> vector<8x128xf32>
    %c0_3 = arith.constant 0 : index
    %c0_4 = arith.constant 0 : index
    %3 = vector.load %arg4[%c0_3, %c0_4] : memref<1x128xf32, #tpu.memory_space<vmem>>, vector<1x128xf32>
    %4 = vector.broadcast %3 : vector<1x128xf32> to vector<8x128xf32>
    %5 = arith.addf %2, %4 : vector<8x128xf32>
    %cst_5 = arith.constant 5.000000e-01 : f32
    %6 = vector.broadcast %cst_5 : f32 to vector<8x128xf32>
    %7 = arith.mulf %6, %5 : vector<8x128xf32>
    %cst_6 = arith.constant 0.707106769 : f32
    %8 = vector.broadcast %cst_6 : f32 to vector<8x128xf32>
    %9 = arith.mulf %5, %8 : vector<8x128xf32>
    %10 = math.erf %9 : vector<8x128xf32>
    %cst_7 = arith.constant 1.000000e+00 : f32
    %11 = vector.broadcast %cst_7 : f32 to vector<8x128xf32>
    %12 = arith.addf %11, %10 : vector<8x128xf32>
    %13 = arith.mulf %7, %12 : vector<8x128xf32>
    %c0_8 = arith.constant 0 : index
    %c0_9 = arith.constant 0 : index
    %14 = vector.load %arg5[%c0_8, %c0_9] : memref<8x128xf32, #tpu.memory_space<vmem>>, vector<8x128xf32>
    tpu.vector_store %arg5[%c0_8, %c0_9], %13 {strides = array<i32>} : memref<8x128xf32, #tpu.memory_space<vmem>>, vector<8x128xf32>,
    return
  }
  func.func @transform_0(%arg0: i32, %arg1: i32) -> (i32, i32) {
    %c0_i32 = arith.constant 0 : i32
    %c0_i32_0 = arith.constant 0 : i32
    return %arg1, %c0_i32 : i32, i32
  }
  func.func @transform_1(%arg0: i32, %arg1: i32) -> (i32, i32) {
    %c0_i32 = arith.constant 0 : i32
    %c0_i32_0 = arith.constant 0 : i32
    return %c0_i32, %arg0 : i32, i32
  }
  func.func @transform_2(%arg0: i32, %arg1: i32) -> (i32, i32) {
    %c0_i32 = arith.constant 0 : i32
    %c0_i32_0 = arith.constant 0 : i32
    return %c0_i32, %arg0 : i32, i32
  }
  func.func @transform_3(%arg0: i32, %arg1: i32) -> (i32, i32) {
    %c0_i32 = arith.constant 0 : i32
    return %arg1, %arg0 : i32, i32
  }
}

</mosaic_0001>

<bundles_post_ra>
// kernel: mlp_layer.1
= control target key start
LH: loop header
LB: loop body
LE: loop exit
PB: predicated region body
PF: predicated region fallthrough
CT: control target
= control target key end

     0   :  { %8 = vsyncpa [#allocation3], 0  ;;  %s311_s0 = inlined_call_operand.vmem [shape: bf16[8,128], index: 0, kind: input, shape index: {}]   ;;  %s312_s1 = inlined_call_operand.hbm [shape: bf16[128,128], index: 1, kind: input, shape index: {}]   ;;  %s313_s2 = inlined_call_operand.vmem [shape: f32[1,128], index: 2, kind: input, shape index: {}]   ;;  %s314_s3 = inlined_call_operand.hbm [shape: f32[8,128], index: 3, kind: output, shape index: {}]  }
   0x1   :  { %9 = vsyncpa [#allocation4], 0  ;;  %s16_s14 = sshll.u32 %s312_s1, 4  ;;  %s275_s15 = smov [#allocation2]   ;;  %s17_s14 = int_to_ptr.hbm [resolvable:$true] %s16_s14 }
   0x2   :  { %s18_s16 = sshll.u32 %s275_s15, 4  ;;  %s276_s17 = smov 64   ;;  %s19_s16 = int_to_ptr.vmem [resolvable:$true] %s18_s16 }
   0x3   :  { %s277_s18 = smov 4  }
   0x4   :  { %24 = dma.hbm_to_vmem [thread:$0]  %s17_s14, 1024, %s19_s16, [#allocation3], %s276_s17, %s276_s17, %s277_s18  }
   0x5   :  { %271 = dma.done.wait [#allocation3], 1024  }
   0x6   :  { %272 = vsyncadd [#allocation3], 4294966272  ;;  %v215_v0 = vld [vmem:[#allocation2 + $0x38] sm:$0xff]  ;;  %v214_v1 = vld [vmem:[#allocation2 + $0x30] sm:$0xff]  ;;  %s165_s24 = sshll.u32 %s314_s3, 4  ;;  %s166_s24 = int_to_ptr.hbm [resolvable:$true] %s165_s24 }
   0x7   :  { %100 = vmatpush.bf16.msra.mxu0 %v215_v0  ;;  %v213_v2 = vld [vmem:[#allocation2 + $0x28] sm:$0xff]  ;;  %v212_v3 = vld [vmem:[#allocation2 + $0x20] sm:$0xff]  ;;  %v211_v4 = vld [vmem:[#allocation2 + $0x18] sm:$0xff] }
   0x8   :  { %v210_v5 = vld [vmem:[#allocation2 + $0x10] sm:$0xff]  ;;  %v209_v6 = vld [vmem:[#allocation2 + $0x8] sm:$0xff]  ;;  %v208_v7 = vld [vmem:[#allocation2] sm:$0xff] }
   0x9   :  { %v31_v8 = vld [vmem:[%s311_s0] sm:$0xf]  ;;  %s278_s0 = smov [#allocation5]  }
   0xa   :  { %v220_v9 = vld [vmem:[%s313_s2] ss:$0 sm:$0xff]  ;;  %s163_s2 = sshll.u32 %s278_s0, 4  ;;  %s164_s2 = int_to_ptr.vmem [resolvable:$true] %s163_s2 }
   0xb   :  { %101 = vmatpush.bf16.msra.mxu0 %v214_v1 }
   0xf   :  { %102 = vmatpush.bf16.msra.mxu0 %v213_v2 }
  0x13   :  { %103 = vmatpush.bf16.msra.mxu0 %v212_v3 }
  0x17   :  { %104 = vmatpush.bf16.msra.mxu0 %v211_v4 }
  0x1b   :  { %105 = vmatpush.bf16.msra.mxu0 %v210_v5 }
  0x1f   :  { %106 = vmatpush.bf16.msra.mxu0 %v209_v6 }
  0x23   :  { %107 = vmatpush.bf16.msra.mxu0 %v208_v7 }
  0x26   :  { %108 = vmatmul.bf16.vlgmr.msra.gmra.mxu0 %v31_v8 }
  0xa3   :  { %v109_v10 = vpop.f32.mrf.mxu0 }
  0xa4   :  { %v110_v11 = vadd.f32 %v220_v9, %v109_v10 }
  0xa6   :  { %v114_v12 = vmul.f32 0.70710677, %v110_v11  ;;  %v113_v49 = vmul.f32 0.5, %v110_v11 }
  0xa8   :  { %v115_v13 = vmul.f32 %v114_v12, %v114_v12 }
  0xaa   :  { %v116_v14 = vmin.f32 %v115_v13, 16.0 }
  0xab   :  { %v111_v15 = vpop.f32.mrf.mxu0 }
  0xac   :  { %v117_v16 = vmul.f32 2.1237322e-06, %v116_v14  ;;  %v128_v17 = vmul.f32 3.8918573e-05, %v116_v14 }
  0xae   :  { %v118_v18 = vadd.f32 0.00028619796, %v117_v16  ;;  %v129_v19 = vadd.f32 0.001143296, %v128_v17 }
  0xb0   :  { %v119_v20 = vmul.f32 %v118_v18, %v116_v14  ;;  %v130_v21 = vmul.f32 %v129_v19, %v116_v14 }
  0xb2   :  { %v131_v22 = vadd.f32 0.014752088, %v130_v21  ;;  %v120_v23 = vadd.f32 0.0036580483, %v119_v20 }
  0xb4   :  { %v132_v24 = vmul.f32 %v131_v22, %v116_v14  ;;  %v121_v26 = vmul.f32 %v120_v23, %v116_v14 }
  0xb6   :  { %v133_v25 = vadd.f32 0.112945676, %v132_v24  ;;  %v122_v29 = vadd.f32 0.05243302, %v121_v26 }
  0xb8   :  { %v134_v27 = vmul.f32 %v133_v25, %v116_v14  ;;  %v123_v32 = vmul.f32 %v122_v29, %v116_v14 }
  0xba   :  { %v135_v28 = vadd.f32 0.4994258, %v134_v27  ;;  %v124_v33 = vadd.f32 0.18741608, %v123_v32 }
  0xbc   :  { %v136_v30 = vmul.f32 %v135_v28, %v116_v14  ;;  %v125_v35 = vmul.f32 %v124_v33, %v116_v14 }
  0xbe   :  { %v137_v31 = vadd.f32 1.0, %v136_v30  ;;  %v126_v39 = vadd.f32 1.1283791, %v125_v35 }
  0xc0   :  { %221 = vrcp.f32 %v137_v31  ;;  %v149_v38 = vand.u32 2147483648, %v137_v31  ;;  %v147_v41 = vand.u32 2147483647, %v137_v31  ;;  %vm143_vm1 = vweird.f32 %v137_v31 }
  0xc1   :  { %v127_v44 = vmul.f32 %v126_v39, %v114_v12 }
  0xc2   :  { %v150_v43 = vor.u32 1.1754944e-38, %v149_v38  ;;  %vm148_vm3 = vcmp.eq.f32.partialorder %v147_v41, 8.507059e+37 }
  0xc6   :  { %v222_v34 = vpop.eup %221 }
  0xc7   :  { %v139_v36 = vmul.f32 %v222_v34, %v137_v31  ;;  %vm144_vm0 = vweird.f32 %v222_v34 }
  0xc8   :  { %vm145_vm2 = vmor %vm143_vm1, %vm144_vm0 }
  0xc9   :  { %v140_v37 = vsub.f32 1.0, %v139_v36 }
  0xcb   :  { %v141_v40 = vmul.f32 %v222_v34, %v140_v37 }
  0xcd   :  { %v142_v42 = vadd.f32 %v222_v34, %v141_v40 }
  0xcf   :  { %v146_v45 = vsel %vm145_vm2, %v222_v34, %v142_v42 }
  0xd0   :  { %v151_v46 = vsel %vm148_vm3, %v150_v43, %v146_v45 }
  0xd1   :  { %v152_v47 = vmul.f32 %v151_v46, %v127_v44 }
  0xd3   :  { %v207_v48 = vclamps-f32 %v152_v47, 1.0 }
  0xd5   :  { %v155_v50 = vadd.f32 1.0, %v207_v48 }
  0xd7   :  { %v156_v51 = vmul.f32 %v155_v50, %v113_v49 }
  0xd9   :  { %157 = vst [vmem:[#allocation5] sm:$0xff] %v156_v51 }
  0xda   :  { %168 = dma.vmem_to_hbm [thread:$0]  %s164_s2, 128, %s166_s24, [#allocation4]  }
  0xdb   :  { %273 = dma.done.wait [#allocation4], 128  }
  0xdc   :  { %274 = vsyncadd [#allocation4], 4294967168 }
  0xdd   :  { %173 = vsyncpa [#allocation3], 1 }
  0xde   :  { %174 = vsyncpa [#allocation4], 1 }

</bundles_post_ra>
